<compile_context>
chip_gen: v5e
topology: v5e:2x2
jax: 0.10.0
libtpu: 0.0.40
codegen_flags: <defaults>
</compile_context>

<pallas_src>
import functools

import jax
import jax.numpy as jnp
from jax.experimental import pallas as pl
from jax.experimental.pallas import tpu as pltpu


def _layernorm_kernel(x_ref, a_ref, b_ref, o_ref, *, eps, valid_size):
    # x_ref: (tile_rows, padded_size); a_ref/b_ref: (1, padded_size), already f32.
    x = x_ref[...].astype(jnp.float32)
    padded_size = x.shape[-1]

    if valid_size == padded_size:
        # Lane dim is already dense & fully valid — no masking needed.
        mean = jnp.sum(x, axis=-1, keepdims=True) * (1.0 / valid_size)
        centered = x - mean
    else:
        # Lane dim was padded up to a multiple of 128; mask padded lanes out of
        # the reductions (they hold zeros and are sliced off by the wrapper).
        lane = jax.lax.broadcasted_iota(jnp.int32, x.shape, x.ndim - 1)
        mask = lane < valid_size
        xm = jnp.where(mask, x, 0.0)
        mean = jnp.sum(xm, axis=-1, keepdims=True) * (1.0 / valid_size)
        centered = jnp.where(mask, x - mean, 0.0)

    # torch.std default: unbiased estimator (divide by N-1).
    var = jnp.sum(centered * centered, axis=-1, keepdims=True) * (
        1.0 / (valid_size - 1)
    )
    std = jnp.sqrt(var)
    # Reciprocal only on the (tile_rows, 1) column, then broadcast-multiply:
    # moves the expensive op off the full tile.
    inv = 1.0 / (std + eps)

    a = a_ref[...]  # f32, VMEM-resident across the grid
    b = b_ref[...]
    y = (centered * inv) * a + b
    o_ref[...] = y.astype(o_ref.dtype)


def _vmem_capacity_bytes():
    """Best-effort device VMEM capacity; conservative (v7x-safe) fallback."""
    try:
        info = pltpu.get_tpu_info()
        cap = getattr(info, "vmem_capacity_bytes", None)
        if cap:
            return int(cap)
    except Exception:
        pass
    return 64 * 1024 * 1024


def layer_norm(x, a, b, eps=1e-05, *, tile_rows=None):
    """x: (batch, seq, size); a, b: (size,)."""
    batch, seq, size = x.shape
    rows = batch * seq
    itemsize = jnp.dtype(x.dtype).itemsize
    # Sublane packing granularity: f32 -> 8, bf16 -> 16, 8-bit -> 32.
    sub = {4: 8, 2: 16, 1: 32}.get(itemsize, 8)

    # --- lane-dense layout: pad `size` up to a multiple of 128 -------------
    lane = 128
    padded_size = pl.cdiv(size, lane) * lane

    x2 = x.reshape(rows, size)
    a2 = a.reshape(1, size).astype(jnp.float32)
    b2 = b.reshape(1, size).astype(jnp.float32)
    if padded_size != size:
        x2 = jnp.pad(x2, ((0, 0), (0, padded_size - size)))
        a2 = jnp.pad(a2, ((0, 0), (0, padded_size - size)))
        b2 = jnp.pad(b2, ((0, 0), (0, padded_size - size)))

    # --- row-tile sizing: VMEM-budgeted, generation aware ------------------
    vmem_cap = _vmem_capacity_bytes()
    if tile_rows is None:
        # I/O pipeline footprint ~= 4 double-buffered tiles (2 in + 2 out);
        # keep ~50% of VMEM as headroom for intermediates / compiler scratch.
        budget = vmem_cap // 2
        tr = budget // (4 * padded_size * itemsize)
        tr = max(sub, min(1024, (tr // sub) * sub))
        tile_rows = int(tr)
    else:
        tile_rows = max(sub, pl.cdiv(int(tile_rows), sub) * sub)

    # Never tile beyond what the row count needs.
    max_tile = pl.cdiv(rows, sub) * sub
    tile_rows = min(tile_rows, max_tile)
    # Keep >= 2 grid steps when possible so v7x's 2nd TensorCore shares work.
    if tile_rows == max_tile and max_tile >= 2 * sub:
        tile_rows = max(sub, ((max_tile // 2) // sub) * sub)

    padded_rows = pl.cdiv(rows, tile_rows) * tile_rows
    if padded_rows != rows:
        x2 = jnp.pad(x2, ((0, padded_rows - rows), (0, 0)))

    grid = (padded_rows // tile_rows,)

    # Explicit VMEM budget covering the double-buffered I/O tiles (+ a/b).
    io_bytes = 4 * tile_rows * padded_size * itemsize + 4 * padded_size * 4
    vmem_limit = int(
        min(int(vmem_cap * 0.9), max(32 * 1024 * 1024, int(io_bytes * 1.5)))
    )

    out = pl.pallas_call(
        functools.partial(_layernorm_kernel, eps=eps, valid_size=size),
        out_shape=jax.ShapeDtypeStruct((padded_rows, padded_size), x.dtype),
        grid_spec=pltpu.PrefetchScalarGridSpec(
            num_scalar_prefetch=0,
            grid=grid,
            in_specs=[
                pl.BlockSpec((tile_rows, padded_size), lambda i: (i, 0)),
                pl.BlockSpec((1, padded_size), lambda i: (0, 0)),
                pl.BlockSpec((1, padded_size), lambda i: (0, 0)),
            ],
            out_specs=pl.BlockSpec((tile_rows, padded_size), lambda i: (i, 0)),
        ),
        compiler_params=pltpu.CompilerParams(
            dimension_semantics=("parallel",),
            vmem_limit_bytes=vmem_limit,
        ),
    )(x2, a2, b2)

    return out[:rows, :size].reshape(batch, seq, size)


def layer_norm_ref(x, a, b, eps=1e-05):
    x32 = x.astype(jnp.float32)
    mean = jnp.mean(x32, axis=-1, keepdims=True)
    n = x.shape[-1]
    var = jnp.sum((x32 - mean) ** 2, axis=-1, keepdims=True) / (n - 1)
    std = jnp.sqrt(var)
    return (a * (x32 - mean) / (std + eps) + b).astype(x.dtype)


if __name__ == "__main__":
    key = jax.random.PRNGKey(0)
    batch, seq, size = 2, 8, 32

    x = jax.random.normal(key, (batch, seq, size), dtype=jnp.float32)
    # Deterministic parameter init matching nn.Parameter(ones/zeros):
    a = jnp.ones((size,), dtype=jnp.float32)
    b = jnp.zeros((size,), dtype=jnp.float32)

    out = layer_norm(x, a, b)
    jax.block_until_ready(out)

    ref = layer_norm_ref(x, a, b)
    assert out.shape == (batch, seq, size)
    assert jnp.allclose(out, ref, atol=1e-5, rtol=1e-5), "mismatch vs reference"

    print("KERNEL_OK")
</pallas_src>

<mosaic_0001>
module attributes {stable_mosaic.version = 11 : i64} {
  func.func @_layernorm_kernel(%arg0: i32, %arg1: memref<8x128xf32, #tpu.memory_space<vmem>>, %arg2: memref<1x128xf32, #tpu.memory_space<vmem>>, %arg3: memref<1x128xf32, #tpu.memory_space<vmem>>, %arg4: memref<8x128xf32, #tpu.memory_space<vmem>>) attributes {dimension_semantics = [#tpu.dimension_semantics<parallel>], iteration_bounds = array<i64: 2>, scalar_prefetch = 0 : i64, scratch_operands = 0 : i64, tpu.core_type = #tpu.core_type<tc>, window_params = [{transform_indices = @transform_0, window_bounds = array<i64: 8, 128>}, {pipeline_mode = #tpu.pipeline_mode<synchronous>, transform_indices = @transform_1, window_bounds = array<i64: 1, 128>}, {pipeline_mode = #tpu.pipeline_mode<synchronous>, transform_indices = @transform_2, window_bounds = array<i64: 1, 128>}, {transform_indices = @transform_3, window_bounds = array<i64: 8, 128>}]} {
    %c0 = arith.constant 0 : index
    %c0_0 = arith.constant 0 : index
    %0 = vector.load %arg1[%c0, %c0_0] : memref<8x128xf32, #tpu.memory_space<vmem>>, vector<8x128xf32>
    %1 = tpu.iota {dimensions = array<i32: 1>} : vector<8x128xi32>
    %c32_i32 = arith.constant 32 : i32
    %2 = vector.broadcast %c32_i32 : i32 to vector<8x128xi32>
    %3 = arith.cmpi slt, %1, %2 : vector<8x128xi32>
    %cst = arith.constant 0.000000e+00 : f32
    %4 = vector.broadcast %cst : f32 to vector<8x128xf32>
    %5 = arith.select %3, %0, %4 : vector<8x128xi1>, vector<8x128xf32>
    %cst_1 = arith.constant dense<0.000000e+00> : vector<8xf32>
    %6 = vector.multi_reduction <add>, %5, %cst_1 [1] : vector<8x128xf32> to vector<8xf32>
    %7 = vector.shape_cast %6 : vector<8xf32> to vector<8x1xf32>
    %cst_2 = arith.constant 3.125000e-02 : f32
    %8 = vector.broadcast %cst_2 : f32 to vector<8x1xf32>
    %9 = arith.mulf %7, %8 : vector<8x1xf32>
    %10 = vector.broadcast %9 : vector<8x1xf32> to vector<8x128xf32>
    %11 = arith.subf %0, %10 : vector<8x128xf32>
    %cst_3 = arith.constant 0.000000e+00 : f32
    %12 = vector.broadcast %cst_3 : f32 to vector<8x128xf32>
    %13 = arith.select %3, %11, %12 : vector<8x128xi1>, vector<8x128xf32>
    %14 = arith.mulf %13, %13 : vector<8x128xf32>
    %cst_4 = arith.constant dense<0.000000e+00> : vector<8xf32>
    %15 = vector.multi_reduction <add>, %14, %cst_4 [1] : vector<8x128xf32> to vector<8xf32>
    %16 = vector.shape_cast %15 : vector<8xf32> to vector<8x1xf32>
    %cst_5 = arith.constant 0.0322580636 : f32
    %17 = vector.broadcast %cst_5 : f32 to vector<8x1xf32>
    %18 = arith.mulf %16, %17 : vector<8x1xf32>
    %19 = math.sqrt %18 : vector<8x1xf32>
    %cst_6 = arith.constant 9.99999974E-6 : f32
    %20 = vector.broadcast %cst_6 : f32 to vector<8x1xf32>
    %21 = arith.addf %19, %20 : vector<8x1xf32>
    %cst_7 = arith.constant 1.000000e+00 : f32
    %22 = vector.broadcast %cst_7 : f32 to vector<8x1xf32>
    %23 = arith.divf %22, %21 : vector<8x1xf32>
    %c0_8 = arith.constant 0 : index
    %c0_9 = arith.constant 0 : index
    %24 = vector.load %arg2[%c0_8, %c0_9] : memref<1x128xf32, #tpu.memory_space<vmem>>, vector<1x128xf32>
    %c0_10 = arith.constant 0 : index
    %c0_11 = arith.constant 0 : index
    %25 = vector.load %arg3[%c0_10, %c0_11] : memref<1x128xf32, #tpu.memory_space<vmem>>, vector<1x128xf32>
    %26 = vector.broadcast %23 : vector<8x1xf32> to vector<8x128xf32>
    %27 = arith.mulf %13, %26 : vector<8x128xf32>
    %28 = vector.broadcast %24 : vector<1x128xf32> to vector<8x128xf32>
    %29 = arith.mulf %27, %28 : vector<8x128xf32>
    %30 = vector.broadcast %25 : vector<1x128xf32> to vector<8x128xf32>
    %31 = arith.addf %29, %30 : vector<8x128xf32>
    %c0_12 = arith.constant 0 : index
    %c0_13 = arith.constant 0 : index
    %32 = vector.load %arg4[%c0_12, %c0_13] : memref<8x128xf32, #tpu.memory_space<vmem>>, vector<8x128xf32>
    tpu.vector_store %arg4[%c0_12, %c0_13], %31 {strides = array<i32>} : memref<8x128xf32, #tpu.memory_space<vmem>>, vector<8x128xf32>,
    return
  }
  func.func @transform_0(%arg0: i32) -> (i32, i32) {
    %c0_i32 = arith.constant 0 : i32
    %c0_i32_0 = arith.constant 0 : i32
    return %arg0, %c0_i32 : i32, i32
  }
  func.func @transform_1(%arg0: i32) -> (i32, i32) {
    %c0_i32 = arith.constant 0 : i32
    %c0_i32_0 = arith.constant 0 : i32
    %c0_i32_1 = arith.constant 0 : i32
    return %c0_i32, %c0_i32_0 : i32, i32
  }
  func.func @transform_2(%arg0: i32) -> (i32, i32) {
    %c0_i32 = arith.constant 0 : i32
    %c0_i32_0 = arith.constant 0 : i32
    %c0_i32_1 = arith.constant 0 : i32
    return %c0_i32, %c0_i32_0 : i32, i32
  }
  func.func @transform_3(%arg0: i32) -> (i32, i32) {
    %c0_i32 = arith.constant 0 : i32
    %c0_i32_0 = arith.constant 0 : i32
    return %arg0, %c0_i32 : i32, i32
  }
}

</mosaic_0001>

<bundles_post_ra>
// kernel: tpu_custom_call.1
= control target key start
LH: loop header
LB: loop body
LE: loop exit
PB: predicated region body
PF: predicated region fallthrough
CT: control target
= control target key end

     0   :  { %8 = vsyncpa [#allocation3], 0  ;;  %s728_s0 = inlined_call_operand.hbm [shape: f32[16,128], index: 0, kind: input, shape index: {}]   ;;  %s729_s1 = inlined_call_operand.hbm [shape: f32[1,128], index: 1, kind: input, shape index: {}]   ;;  %s730_s2 = inlined_call_operand.vmem [shape: f32[1,128], index: 2, kind: input, shape index: {}]   ;;  %s731_s3 = inlined_call_operand.hbm [shape: f32[16,128], index: 3, kind: output, shape index: {}]  }
   0x1   :  { %10 = vsyncpa [#allocation3 + $0x1], 0 }
   0x2   :  { %11 = vsyncpa [#allocation6], 0 }
   0x3   :  { %12 = vsyncpa [#allocation4], 0 }
   0x4   :  { %14 = vsyncpa [#allocation4 + $0x1], 0  ;;  %s583_s12 = smov 0   ;;  %s585_s13 = smov 0  }
   0x5   :  { %s587_s14 = smov 0   ;;  %s589_s15 = smov 0  }
   0x6 LB: > { %s604_s16 = sadd.s32 4294967295, %s560_s15   ;;  %s353_s17 = sadd.s32 4294967294, %s560_s15   ;;  %s560_s15 = sphi %s589_s15, %s741_s15   ;;  %s556_s14 = sphi %s587_s14, %s740_s14   ;;  %s552_s13 = sphi %s585_s13, %s739_s13   ;;  %s548_s12 = sphi %s583_s12, %s738_s12  }
   0x7   : > { %p40_p0 = scmp.ne.s32.totalorder %s552_s13, %s548_s12  ;;  %p41_p1 = scmp.eq.s32.totalorder %s604_s16, 0 }
   0x8   : > { %p106_p2 = scmp.eq.s32.totalorder %s604_s16, 1  ;;  %p112_p3 = scmp.eq.s32.totalorder %s353_s17, 1 }
   0x9   : > { %p613_p4 = por %p41_p1, %p40_p0  ;;  %p354_p5 = scmp.ge.s32.totalorder %s560_s15, 1 }
   0xa   : > { %p618_p6 = por %p112_p3, %p40_p0  ;;  %p119_p7 = scmp.lt.s32.totalorder %s560_s15, 3 }
   0xb   : > { %s131_s22 = sshll.u32 %s729_s1, 4  ;;  %s562_s24 = smov [#allocation5]   ;;  %s132_s22 = int_to_ptr.hbm [resolvable:$true] %s131_s22 }
   0xc   : > { %p626_p8 = pnand %p354_p5, %p119_p7  ;;  %s133_s25 = sshll.u32 %s562_s24, 4  ;;  %s134_s25 = int_to_ptr.vmem [resolvable:$true] %s133_s25 }
   0xd   : > { %s636_s26 = sadd.s32 1, %s560_s15   ;;  %s27_s27 = sadd.s32 1, %s556_s14 }
   0xe   : > { %p375_p10 = pneg %p626_p8  ;;  %s24_s28 = ssub.s32 %s560_s15, %s636_s26 }
   0xf   : > { %p25_p12 = scmp.eq.s32.totalorder %s24_s28, 0  ;;  %p34_p13 = scmp.ne.s32.totalorder %s556_s14, %s552_s13 }
  0x10   : > { %p376_p11 = pnand %p375_p10, %p41_p1  ;;  %p35_p0 = scmp.eq.s32.totalorder %s560_s15, 0 }
  0x11   : > { %s645_s29 = scalar_select %p25_p12, %s556_s14, %s27_s27  }
  0x12   : > { %378 = dma.hbm_to_vmem [thread:$0]  (!%p376_p11), %s132_s22, 16, %s134_s25, [#allocation6]  }
  0x13   : > { %p649_p3 = por %p106_p2, %p34_p13  ;;  %p388_p5 = scmp.lt.s32.totalorder %s560_s15, 2 }
  0x14   : > { %s147_s4 = sand.u32 1, %s556_s14   ;;  %s358_s5 = sshll.u32 %s560_s15, 3 }
  0x15   : > { %p36_p7 = por %p35_p0, %p34_p13  ;;  %s357_s6 = sshll.u32 %s147_s4, 3 }
  0x16   : > { %s155_s9 = scalar_lea.hbm %s728_s0, %s358_s5  ;;  %s151_s11 = scalar_lea.vmem [#allocation2], %s357_s6 }
  0x17   : > { %s157_s10 = sshll.u32 %s155_s9, 4  ;;  %s159_s17 = sshll.u32 %s151_s11, 4  ;;  %s158_s10 = int_to_ptr.hbm [resolvable:$true] %s157_s10  ;;  %s160_s17 = int_to_ptr.vmem [resolvable:$true] %s159_s17 }
  0x18   : > { %p659_p10 = pnand %p388_p5, %p36_p7  ;;  %s148_s21 = scalar_lea.sflag [#allocation3], %s147_s4 }
  0x19   : > { %s460_s22 = sshra.s32 %s158_s10, 4  ;;  %s467_s28 = scalar_lea.hbm %s728_s0, 16  ;;  %s461_s22 = int_to_ptr.hbm [resolvable:$true] %s460_s22 }
  0x1a   : > { %s462_s24 = scalar_lea.hbm %s461_s22, 8  ;;  %p464_p11 = pneg %p659_p10 }
  0x1b   : > { %p463_p2 = scmp.ne.s32.totalorder %s461_s22, %s462_s24  ;;  %p468_p0 = scmp.lt.s32.totalorder %s461_s22, %s728_s0 }
  0x1c   : > { %p469_p5 = scmp.lt.s32.totalorder %s467_s28, %s462_s24 }
  0x1d   : > { %p465_p12 = pnand %p464_p11, %p463_p2 }
  0x1e   : > { %p470_p7 = por %p469_p5, %p468_p0 }
  0x1f   : > { %p466_p13 = pneg %p465_p12 }
  0x21   : > { %p471_p9 = pnand %p470_p7, %p466_p13 }
  0x23   : > { %474 = shalt.err (!%p471_p9)
}
  0x24   : > { %382 = dma.hbm_to_vmem [thread:$0]  (!%p659_p10), %s158_s10, 128, %s160_s17, %s148_s21  }
  0x25   : > { %168 = sbr.rel (%p626_p8) target bundleno = 341 (0x155), region = 32  ;;  %s676_s4 = sand.u32 (!%p626_p8), 1, %s552_s13  }
  0x26   : > { %s360_s7 = sshll.u32 (!%p626_p8), %s676_s4, 3  ;;  %s171_s8 = scalar_lea.sflag (!%p626_p8), [#allocation3], %s676_s4 }
  0x27   : > { %s174_s9 = scalar_lea.vmem (!%p626_p8), [#allocation2], %s360_s7 }
  0x2a   : > { %535 = dma.done.wait (%p613_p4), %s171_s8, 128  }
  0x2b   : > { %537 = vsyncadd (%p613_p4), %s171_s8, 4294967168 }
  0x2c   : > { %539 = dma.done.wait (%p41_p1), [#allocation6], 16  }
  0x2d   : > { %541 = vsyncadd (%p41_p1), [#allocation6], 4294967280  ;;  %v204_v0 = vlaneseq  ;;  %v203_v2 = vld [vmem:[%s174_s9] sm:$0xff]  ;;  %s364_s18 = sshll.u32 %s604_s16, 3  ;;  %v424_v31 = vld [vmem:[#allocation5] ss:$0 sm:$0xff] }
  0x2e   : > { %s268_s11 = scalar_lea.hbm %s731_s3, %s364_s18  ;;  %v425_v34 = vld [vmem:[%s730_s2] ss:$0 sm:$0xff]  ;;  %s202_s16 = scalar_lea.vmem [#allocation7], %s360_s7 }
  0x2f   : > { %v205_v1 = vand.u32 127, %v204_v0  ;;  %s270_s21 = sshll.u32 %s202_s16, 4  ;;  %s272_s22 = sshll.u32 %s268_s11, 4  ;;  %s271_s21 = int_to_ptr.vmem [resolvable:$true] %s270_s21  ;;  %s273_s22 = int_to_ptr.hbm [resolvable:$true] %s272_s22 }
  0x30   : > { %s258_s24 = scalar_lea.sflag [#allocation4], %s676_s4  ;;  %s504_s25 = sshra.s32 %s273_s22, 4  ;;  %s505_s25 = int_to_ptr.hbm [resolvable:$true] %s504_s25 }
  0x31   : > { %vm206_vm0 = vcmp.lt.s32.totalorder %v205_v1, 32  ;;  %s506_s27 = scalar_lea.hbm %s505_s25, 8  ;;  %s510_s6 = scalar_lea.hbm %s731_s3, 16 }
  0x32   : > { %v207_v3 = vsel %vm206_vm0, %v203_v2, 0.0  ;;  %p507_p1 = scmp.ne.s32.totalorder %s505_s25, %s506_s27  ;;  %p511_p9 = scmp.lt.s32.totalorder %s505_s25, %s731_s3 }
  0x33   : > { %208 = vadd.xlane.f32.xlu0 %v207_v3  ;;  %p512_p10 = scmp.lt.s32.totalorder %s510_s6, %s506_s27 }
  0x34   : > { %p508_p4 = pnand %p507_p1, %p649_p3 }
  0x35   : > { %p513_p2 = por %p512_p10, %p511_p9 }
  0x36   : > { %p509_p8 = pneg %p508_p4 }
  0x38   : > { %p514_p11 = pnand %p513_p2, %p509_p8 }
  0xa6   : > { %v209_v4 = vpop.xlane.xlu0 %208 }
  0xa7   : > { %v210_v5 = vmul.f32 0.03125, %v209_v4 }
  0xa9   : > { %v211_v6 = vsub.f32 %v203_v2, %v210_v5 }
  0xab   : > { %v212_v7 = vsel %vm206_vm0, %v211_v6, 0.0 }
  0xac   : > { %v213_v8 = vmul.f32 %v212_v7, %v212_v7 }
  0xae   : > { %214 = vadd.xlane.f32.xlu0 %v213_v8 }
 0x121   : > { %v215_v9 = vpop.xlane.xlu0 %214 }
 0x122   : > { %v216_v10 = vmul.f32 0.032258064, %v215_v9 }
 0x124   : > { %426 = vrsqrt.f32 %v216_v10  ;;  %vm224_vm1 = vcmp.eq.f32.partialorder %v216_v10, inf  ;;  %v227_v18 = vand.u32 2147483648, %v216_v10  ;;  %vm226_vm2 = vcmp.eq.f32.partialorder %v216_v10, 0.0 }
 0x12a   : > { %v427_v11 = vpop.eup %426 }
 0x12b   : > { %v218_v12 = vmul.f32 %v427_v11, %v216_v10 }
 0x12d   : > { %v219_v13 = vmul.f32 %v427_v11, %v218_v12 }
 0x12f   : > { %v220_v14 = vmul.f32 0.5, %v219_v13 }
 0x131   : > { %v221_v15 = vsub.f32 1.5, %v220_v14 }
 0x133   : > { %v222_v16 = vmul.f32 %v427_v11, %v221_v15 }
 0x135   : > { %v223_v17 = vmul.f32 %v222_v16, %v216_v10 }
 0x137   : > { %v225_v19 = vsel %vm224_vm1, %v216_v10, %v223_v17 }
 0x138   : > { %v228_v20 = vsel %vm226_vm2, %v227_v18, %v225_v19 }
 0x139   : > { %v229_v21 = vadd.f32 1e-05, %v228_v20 }
 0x13b   : > { %428 = vrcp.f32 %v229_v21  ;;  %v241_v25 = vand.u32 2147483648, %v229_v21  ;;  %v239_v27 = vand.u32 2147483647, %v229_v21  ;;  %vm235_vm4 = vweird.f32 %v229_v21 }
 0x13d   : > { %v242_v29 = vor.u32 1.1754944e-38, %v241_v25  ;;  %vm240_vm6 = vcmp.eq.f32.partialorder %v239_v27, 8.507059e+37 }
 0x141   : > { %v429_v22 = vpop.eup %428 }
 0x142   : > { %v231_v23 = vmul.f32 %v429_v22, %v229_v21  ;;  %vm236_vm3 = vweird.f32 %v429_v22 }
 0x143   : > { %vm237_vm5 = vmor %vm235_vm4, %vm236_vm3 }
 0x144   : > { %v232_v24 = vsub.f32 1.0, %v231_v23 }
 0x146   : > { %v233_v26 = vmul.f32 %v429_v22, %v232_v24 }
 0x148   : > { %v234_v28 = vadd.f32 %v429_v22, %v233_v26 }
 0x14a   : > { %v238_v30 = vsel %vm237_vm5, %v429_v22, %v234_v28 }
 0x14b   : > { %v243_v32 = vsel %vm240_vm6, %v242_v29, %v238_v30 }
 0x14c   : > { %v247_v33 = vmul.f32 %v243_v32, %v212_v7 }
 0x14e   : > { %v251_v35 = vmul.f32 %v424_v31, %v247_v33 }
 0x150   : > { %v255_v36 = vadd.f32 %v425_v34, %v251_v35 }
 0x152   : > { %256 = vst [vmem:[%s202_s16] sm:$0xff] %v255_v36 }
 0x153   : > { %517 = shalt.err (!%p514_p11)
}
 0x154   : > { %373 = dma.vmem_to_hbm [thread:$0]  (%p649_p3), %s271_s21, 128, %s273_s22, %s258_s24  }
 0x155 PF: > { %s284_s4 = sand.u32 1, %s548_s12   ;;  %p737_p12 = scmp.ge.s32.totalorder %s560_s15, 2 }
 0x156   : > { %s285_s9 = scalar_lea.sflag [#allocation4], %s284_s4 }
 0x157   : > { %p384_p13 = pnand %p737_p12, %p618_p6 }
 0x159   : > { %p385_p0 = pneg %p384_p13 }
 0x15b   : > { %543 = dma.done.wait (%p385_p0), %s285_s9, 128  }
 0x15c   : > { %545 = vsyncadd (%p385_p0), %s285_s9, 4294967168  ;;  %p17_p5 = scmp.ge.s32.totalorder %s636_s26, 4   ;;  %s738_s12 = smov %s552_s13 }
 0x15d   : > { %s739_s13 = smov %s556_s14  ;;  %s740_s14 = smov %s645_s29 }
 0x15e   : > { %s741_s15 = smov %s636_s26  ;;  %19 = sbr.rel (!%p17_p5) target bundleno = 6 (0x6), region = 81 }
 0x163   :  { %291 = vsyncpa [#allocation3], 1 }
 0x164   :  { %293 = vsyncpa [#allocation3 + $0x1], 1 }
 0x165   :  { %294 = vsyncpa [#allocation6], 1 }
 0x166   :  { %295 = vsyncpa [#allocation4], 1 }
 0x167   :  { %297 = vsyncpa [#allocation4 + $0x1], 1 }

</bundles_post_ra>
